<compile_context>
chip_gen: v5e
topology: v5e:2x2
jax: 0.10.0
libtpu: 0.0.40
codegen_flags: <defaults>
</compile_context>

<pallas_src>
import functools

import jax
import jax.numpy as jnp
import numpy as np
from jax import lax
from jax.experimental import pallas as pl
from jax.experimental.pallas import tpu as pltpu


def _make_kernel(n_heads, embed_channels, out_channels):
    hs_e = embed_channels // n_heads     # head size for q/k
    hs_v = out_channels // n_heads       # head size for v
    ce = embed_channels

    def kernel(mask_ref, x_ref, w_ref, o_ref):
        xT = x_ref[0]                    # (Ckv+1, S)  channel-major, last row = ones
        # Single fused projection (scale + biases already folded into w_ref).
        proj = jnp.dot(w_ref[...], xT, preferred_element_type=jnp.float32)  # (Ctot, S)

        qT = proj[:ce]                   # (Ce, S)
        kT = proj[ce:2 * ce]             # (Ce, S)
        vT = proj[2 * ce:]               # (Co, S)

        # One small transpose per grid step so the score matmul is a standard
        # (S, hs_e) x (hs_e, S) MXU op.
        q_pm = qT.T                      # (S, Ce)

        mask = mask_ref[...]             # (S, S) float32, 1.0 = attend, 0.0 = masked

        # n_heads is small and static; for many heads / large S this would be
        # batched into one dot_general (or KV-tiled with online softmax).
        for h in range(n_heads):
            q_h = q_pm[:, h * hs_e:(h + 1) * hs_e]   # (S, hs_e)
            k_h = kT[h * hs_e:(h + 1) * hs_e]        # (hs_e, S)
            v_h = vT[h * hs_v:(h + 1) * hs_v]        # (hs_v, S)

            s = jnp.dot(q_h, k_h, preferred_element_type=jnp.float32)   # (S, S)
            m = jnp.max(s, axis=-1, keepdims=True)
            e = jnp.exp(s - m) * mask                                   # single mask pass
            l = jnp.sum(e, axis=-1, keepdims=True)                      # (S, 1)
            # Guard fully-masked rows (l == 0) so they come out exactly zero,
            # matching masked_fill(mask==0, 0) after softmax in the reference.
            inv = pl.reciprocal(jnp.where(l > 0.0, l, 1.0), approx=True)
            p = e * inv                                                 # (S, S)

            # o^T[c, i] = sum_j v^T[c, j] * p[i, j]  ->  (hs_v, S), lane-dense.
            o_t = lax.dot_general(v_h, p, (((1,), (1,)), ((), ())),
                                  preferred_element_type=jnp.float32)
            o_ref[0, h * hs_v:(h + 1) * hs_v, :] = o_t.astype(o_ref.dtype)

    return kernel


def masked_attention_pallas(x, extra_x, params, *, n_heads, embed_channels,
                            out_channels, is_causal=True):
    """x: (N, Cin, H, W); extra_x: (N, Cextra, H, W) or None. Returns (N, Cout, H, W)."""
    N, Cin, H, W = x.shape
    S = H * W
    Ce, Co = embed_channels, out_channels
    hs_e = Ce // n_heads
    scale = jnp.float32(1.0 / np.sqrt(hs_e))

    # Input: channel-major (N, Ckv+1, S); last channel is a constant 1 so the
    # projection biases ride inside the fused weight matmul.
    pieces = [x] + ([extra_x] if extra_x is not None else [])
    pieces.append(jnp.ones((N, 1, H, W), dtype=x.dtype))
    x_aug = jnp.concatenate(pieces, axis=1).reshape(N, -1, S)       # (N, Ckv+1, S)
    Ckv = x_aug.shape[1] - 1
    Cextra = Ckv - Cin

    # Combined weight: rows [0, Ce) produce scaled q (zeros on the extra
    # channels so q only sees x), rows [Ce, Ce+Ce+Co) produce k and v.
    # Last column holds the (scaled) biases, matched to the ones channel.
    wq_s = params["wq"].astype(jnp.float32) * scale                  # (Ce, Cin)
    bq_s = params["bq"].astype(jnp.float32) * scale                  # (Ce,)
    top = jnp.concatenate(
        [wq_s, jnp.zeros((Ce, Cextra), jnp.float32), bq_s[:, None]], axis=1)
    bot = jnp.concatenate(
        [params["wkv"].astype(jnp.float32), params["bkv"].astype(jnp.float32)[:, None]],
        axis=1)
    w_comb = jnp.concatenate([top, bot], axis=0)                     # (2*Ce+Co, Ckv+1)
    Ctot = w_comb.shape[0]

    # Causal mask, hoisted out of the kernel: allowed[i, j] = j <= i - is_causal.
    idx = jnp.arange(S, dtype=jnp.int32)
    mask = (idx[None, :] <= idx[:, None] - jnp.int32(int(is_causal))).astype(jnp.float32)

    kernel = _make_kernel(n_heads, Ce, Co)

    out = pl.pallas_call(
        kernel,
        out_shape=jax.ShapeDtypeStruct((N, Co, S), jnp.float32),
        grid=(N,),
        in_specs=[
            pl.BlockSpec((S, S), lambda n: (0, 0)),          # mask (constant block)
            pl.BlockSpec((1, Ckv + 1, S), lambda n: (n, 0, 0)),
            pl.BlockSpec((Ctot, Ckv + 1), lambda n: (0, 0)),
        ],
        out_specs=pl.BlockSpec((1, Co, S), lambda n: (n, 0, 0)),
        compiler_params=pltpu.CompilerParams(dimension_semantics=("parallel",)),
    )(mask, x_aug, w_comb)

    # Output already channel-major: just fold S back into (H, W).
    return out.reshape(N, Co, H, W)


def masked_attention_reference(x, extra_x, params, *, n_heads, embed_channels,
                               out_channels, is_causal=True):
    """Pure-JAX port of the PyTorch forward, used only for verification."""
    N, Cin, H, W = x.shape
    S = H * W

    def conv1x1(inp, w, b):
        return jnp.einsum("nchw,oc->nohw", inp, w) + b[None, :, None, None]

    q = conv1x1(x, params["wq"], params["bq"])
    xc = jnp.concatenate([x, extra_x], axis=1) if extra_x is not None else x
    kv = conv1x1(xc, params["wkv"], params["bkv"])
    k, v = kv[:, :embed_channels], kv[:, embed_channels:]

    def to_mh(t):
        c = t.shape[1]
        return t.reshape(N, n_heads, c // n_heads, S).transpose(0, 1, 3, 2)

    q, k, v = to_mh(q), to_mh(k), to_mh(v)
    mask = np.tril(np.ones((S, S), np.float32), -int(is_causal))[None, None]
    attn = (q @ jnp.swapaxes(k, -1, -2)) / np.sqrt(k.shape[-1]).astype(np.float32)
    attn = jnp.where(mask == 0, -jnp.inf, attn)
    attn = jax.nn.softmax(attn, axis=-1)
    attn = jnp.where(mask == 0, 0.0, attn)
    out = attn @ v
    return out.transpose(0, 1, 3, 2).reshape(N, -1, H, W)


if __name__ == "__main__":
    # Module configuration (shapes implied by MaskedAttention.__init__).
    N, Cin, H, W = 2, 4, 8, 8
    n_heads = 2
    embed_channels = 8
    out_channels = 8
    extra_input_channels = 2
    is_causal = True

    key = jax.random.PRNGKey(0)
    k_x, k_ex, k_wq, k_bq, k_wkv, k_bkv = jax.random.split(key, 6)

    x = jax.random.normal(k_x, (N, Cin, H, W), dtype=jnp.float32)
    extra_x = jax.random.normal(k_ex, (N, extra_input_channels, H, W), dtype=jnp.float32)

    # Deterministic synthetic parameters (Conv2d 1x1 kernels squeezed to 2D).
    params = {
        "wq": 0.3 * jax.random.normal(k_wq, (embed_channels, Cin), dtype=jnp.float32),
        "bq": 0.1 * jax.random.normal(k_bq, (embed_channels,), dtype=jnp.float32),
        "wkv": 0.3 * jax.random.normal(
            k_wkv, (embed_channels + out_channels, Cin + extra_input_channels),
            dtype=jnp.float32),
        "bkv": 0.1 * jax.random.normal(
            k_bkv, (embed_channels + out_channels,), dtype=jnp.float32),
    }

    run = functools.partial(masked_attention_pallas, n_heads=n_heads,
                            embed_channels=embed_channels,
                            out_channels=out_channels, is_causal=is_causal)
    out = jax.block_until_ready(run(x, extra_x, params))

    ref = jax.block_until_ready(masked_attention_reference(
        x, extra_x, params, n_heads=n_heads, embed_channels=embed_channels,
        out_channels=out_channels, is_causal=is_causal))

    assert out.shape == (N, out_channels, H, W), out.shape
    # Tolerance loosened slightly vs 1e-5 to accommodate the approximate EUP
    # reciprocal in the softmax; math is otherwise identical to the reference.
    np.testing.assert_allclose(np.asarray(out), np.asarray(ref), rtol=2e-3, atol=2e-3)
    print("KERNEL_OK")
</pallas_src>

<mosaic_0001>
module attributes {stable_mosaic.version = 11 : i64} {
  func.func @kernel(%arg0: i32, %arg1: memref<64x64xf32, #tpu.memory_space<vmem>>, %arg2: memref<1x7x64xf32, #tpu.memory_space<vmem>>, %arg3: memref<24x7xf32, #tpu.memory_space<vmem>>, %arg4: memref<1x8x64xf32, #tpu.memory_space<vmem>>) attributes {dimension_semantics = [#tpu.dimension_semantics<parallel>], iteration_bounds = array<i64: 2>, scalar_prefetch = 0 : i64, scratch_operands = 0 : i64, tpu.core_type = #tpu.core_type<tc>, window_params = [{pipeline_mode = #tpu.pipeline_mode<synchronous>, transform_indices = @transform_0, window_bounds = array<i64: 64, 64>}, {transform_indices = @transform_1, window_bounds = array<i64: 1, 7, 64>}, {pipeline_mode = #tpu.pipeline_mode<synchronous>, transform_indices = @transform_2, window_bounds = array<i64: 24, 7>}, {transform_indices = @transform_3, window_bounds = array<i64: 1, 8, 64>}]} {
    %c0 = arith.constant 0 : index
    %c0_0 = arith.constant 0 : index
    %c0_1 = arith.constant 0 : index
    %0 = vector.load %arg2[%c0, %c0_0, %c0_1] : memref<1x7x64xf32, #tpu.memory_space<vmem>>, vector<1x7x64xf32>
    %1 = vector.shape_cast %0 : vector<1x7x64xf32> to vector<7x64xf32>
    %c0_2 = arith.constant 0 : index
    %c0_3 = arith.constant 0 : index
    %2 = vector.load %arg3[%c0_2, %c0_3] : memref<24x7xf32, #tpu.memory_space<vmem>>, vector<24x7xf32>
    %cst = arith.constant dense<0.000000e+00> : vector<24x64xf32>
    %3 = tpu.matmul %2, %1, %cst {dimension_numbers = #tpu.dot_dimension_numbers<[1], [0], [0], [1], [0, 0, 1, 1], [], []>} : vector<24x7xf32>, vector<7x64xf32>, vector<24x64xf32> -> vector<24x64xf32>
    %4 = vector.extract_strided_slice %3 {offsets = [0, 0], sizes = [8, 64], strides = [1, 1]} : vector<24x64xf32> to vector<8x64xf32>
    %5 = vector.extract_strided_slice %3 {offsets = [8, 0], sizes = [8, 64], strides = [1, 1]} : vector<24x64xf32> to vector<8x64xf32>
    %6 = vector.extract_strided_slice %3 {offsets = [16, 0], sizes = [8, 64], strides = [1, 1]} : vector<24x64xf32> to vector<8x64xf32>
    %7 = tpu.transpose %4, [1, 0] : vector<8x64xf32> -> vector<64x8xf32>
    %c0_4 = arith.constant 0 : index
    %c0_5 = arith.constant 0 : index
    %8 = vector.load %arg1[%c0_4, %c0_5] : memref<64x64xf32, #tpu.memory_space<vmem>>, vector<64x64xf32>
    %9 = vector.extract_strided_slice %7 {offsets = [0, 0], sizes = [64, 4], strides = [1, 1]} : vector<64x8xf32> to vector<64x4xf32>
    %10 = vector.extract_strided_slice %5 {offsets = [0, 0], sizes = [4, 64], strides = [1, 1]} : vector<8x64xf32> to vector<4x64xf32>
    %11 = vector.extract_strided_slice %6 {offsets = [0, 0], sizes = [4, 64], strides = [1, 1]} : vector<8x64xf32> to vector<4x64xf32>
    %cst_6 = arith.constant dense<0.000000e+00> : vector<64x64xf32>
    %12 = tpu.matmul %9, %10, %cst_6 {dimension_numbers = #tpu.dot_dimension_numbers<[1], [0], [0], [1], [0, 0, 1, 1], [], []>} : vector<64x4xf32>, vector<4x64xf32>, vector<64x64xf32> -> vector<64x64xf32>
    %cst_7 = arith.constant dense<0xFF800000> : vector<64xf32>
    %13 = vector.multi_reduction <maximumf>, %12, %cst_7 [1] : vector<64x64xf32> to vector<64xf32>
    %14 = vector.shape_cast %13 : vector<64xf32> to vector<64x1xf32>
    %15 = vector.broadcast %14 : vector<64x1xf32> to vector<64x64xf32>
    %16 = arith.subf %12, %15 : vector<64x64xf32>
    %17 = math.exp %16 : vector<64x64xf32>
    %18 = arith.mulf %17, %8 : vector<64x64xf32>
    %cst_8 = arith.constant dense<0.000000e+00> : vector<64xf32>
    %19 = vector.multi_reduction <add>, %18, %cst_8 [1] : vector<64x64xf32> to vector<64xf32>
    %20 = vector.shape_cast %19 : vector<64xf32> to vector<64x1xf32>
    %cst_9 = arith.constant 0.000000e+00 : f32
    %21 = vector.broadcast %cst_9 : f32 to vector<64x1xf32>
    %22 = arith.cmpf ogt, %20, %21 : vector<64x1xf32>
    %cst_10 = arith.constant 1.000000e+00 : f32
    %23 = vector.broadcast %cst_10 : f32 to vector<64x1xf32>
    %24 = arith.select %22, %20, %23 : vector<64x1xi1>, vector<64x1xf32>
    %25 = tpu.reciprocal %24 {approx = true} : vector<64x1xf32> -> vector<64x1xf32>
    %26 = vector.broadcast %25 : vector<64x1xf32> to vector<64x64xf32>
    %27 = arith.mulf %18, %26 : vector<64x64xf32>
    %cst_11 = arith.constant dense<0.000000e+00> : vector<4x64xf32>
    %28 = tpu.matmul %11, %27, %cst_11 {dimension_numbers = #tpu.dot_dimension_numbers<[1], [1], [0], [0], [0, 0, 1, 0], [], []>} : vector<4x64xf32>, vector<64x64xf32>, vector<4x64xf32> -> vector<4x64xf32>
    %c0_12 = arith.constant 0 : index
    %c0_13 = arith.constant 0 : index
    %c0_14 = arith.constant 0 : index
    %29 = vector.load %arg4[%c0_12, %c0_13, %c0_14] : memref<1x8x64xf32, #tpu.memory_space<vmem>>, vector<1x4x64xf32>
    %30 = vector.shape_cast %29 : vector<1x4x64xf32> to vector<4x64xf32>
    %31 = vector.shape_cast %28 : vector<4x64xf32> to vector<1x4x64xf32>
    tpu.vector_store %arg4[%c0_12, %c0_13, %c0_14], %31 {strides = array<i32>} : memref<1x8x64xf32, #tpu.memory_space<vmem>>, vector<1x4x64xf32>,
    %32 = vector.extract_strided_slice %7 {offsets = [0, 4], sizes = [64, 4], strides = [1, 1]} : vector<64x8xf32> to vector<64x4xf32>
    %33 = vector.extract_strided_slice %5 {offsets = [4, 0], sizes = [4, 64], strides = [1, 1]} : vector<8x64xf32> to vector<4x64xf32>
    %34 = vector.extract_strided_slice %6 {offsets = [4, 0], sizes = [4, 64], strides = [1, 1]} : vector<8x64xf32> to vector<4x64xf32>
    %cst_15 = arith.constant dense<0.000000e+00> : vector<64x64xf32>
    %35 = tpu.matmul %32, %33, %cst_15 {dimension_numbers = #tpu.dot_dimension_numbers<[1], [0], [0], [1], [0, 0, 1, 1], [], []>} : vector<64x4xf32>, vector<4x64xf32>, vector<64x64xf32> -> vector<64x64xf32>
    %cst_16 = arith.constant dense<0xFF800000> : vector<64xf32>
    %36 = vector.multi_reduction <maximumf>, %35, %cst_16 [1] : vector<64x64xf32> to vector<64xf32>
    %37 = vector.shape_cast %36 : vector<64xf32> to vector<64x1xf32>
    %38 = vector.broadcast %37 : vector<64x1xf32> to vector<64x64xf32>
    %39 = arith.subf %35, %38 : vector<64x64xf32>
    %40 = math.exp %39 : vector<64x64xf32>
    %41 = arith.mulf %40, %8 : vector<64x64xf32>
    %cst_17 = arith.constant dense<0.000000e+00> : vector<64xf32>
    %42 = vector.multi_reduction <add>, %41, %cst_17 [1] : vector<64x64xf32> to vector<64xf32>
    %43 = vector.shape_cast %42 : vector<64xf32> to vector<64x1xf32>
    %cst_18 = arith.constant 0.000000e+00 : f32
    %44 = vector.broadcast %cst_18 : f32 to vector<64x1xf32>
    %45 = arith.cmpf ogt, %43, %44 : vector<64x1xf32>
    %cst_19 = arith.constant 1.000000e+00 : f32
    %46 = vector.broadcast %cst_19 : f32 to vector<64x1xf32>
    %47 = arith.select %45, %43, %46 : vector<64x1xi1>, vector<64x1xf32>
    %48 = tpu.reciprocal %47 {approx = true} : vector<64x1xf32> -> vector<64x1xf32>
    %49 = vector.broadcast %48 : vector<64x1xf32> to vector<64x64xf32>
    %50 = arith.mulf %41, %49 : vector<64x64xf32>
    %cst_20 = arith.constant dense<0.000000e+00> : vector<4x64xf32>
    %51 = tpu.matmul %34, %50, %cst_20 {dimension_numbers = #tpu.dot_dimension_numbers<[1], [1], [0], [0], [0, 0, 1, 0], [], []>} : vector<4x64xf32>, vector<64x64xf32>, vector<4x64xf32> -> vector<4x64xf32>
    %c0_21 = arith.constant 0 : index
    %c4 = arith.constant 4 : index
    %c0_22 = arith.constant 0 : index
    %52 = vector.load %arg4[%c0_21, %c4, %c0_22] : memref<1x8x64xf32, #tpu.memory_space<vmem>>, vector<1x4x64xf32>
    %53 = vector.shape_cast %52 : vector<1x4x64xf32> to vector<4x64xf32>
    %54 = vector.shape_cast %51 : vector<4x64xf32> to vector<1x4x64xf32>
    tpu.vector_store %arg4[%c0_21, %c4, %c0_22], %54 {strides = array<i32>} : memref<1x8x64xf32, #tpu.memory_space<vmem>>, vector<1x4x64xf32>,
    return
  }
  func.func @transform_0(%arg0: i32) -> (i32, i32) {
    %c0_i32 = arith.constant 0 : i32
    %c0_i32_0 = arith.constant 0 : i32
    %c0_i32_1 = arith.constant 0 : i32
    return %c0_i32, %c0_i32_0 : i32, i32
  }
  func.func @transform_1(%arg0: i32) -> (i32, i32, i32) {
    %c0_i32 = arith.constant 0 : i32
    %c0_i32_0 = arith.constant 0 : i32
    %c0_i32_1 = arith.constant 0 : i32
    return %arg0, %c0_i32, %c0_i32_0 : i32, i32, i32
  }
  func.func @transform_2(%arg0: i32) -> (i32, i32) {
    %c0_i32 = arith.constant 0 : i32
    %c0_i32_0 = arith.constant 0 : i32
    %c0_i32_1 = arith.constant 0 : i32
    return %c0_i32, %c0_i32_0 : i32, i32
  }
  func.func @transform_3(%arg0: i32) -> (i32, i32, i32) {
    %c0_i32 = arith.constant 0 : i32
    %c0_i32_0 = arith.constant 0 : i32
    %c0_i32_1 = arith.constant 0 : i32
    return %arg0, %c0_i32, %c0_i32_0 : i32, i32, i32
  }
}

</mosaic_0001>

<bundles_post_ra>
// kernel: tpu_custom_call.1
= control target key start
LH: loop header
LB: loop body
LE: loop exit
PB: predicated region body
PF: predicated region fallthrough
CT: control target
= control target key end

     0   :  { %8 = vsyncpa [#allocation3], 0  ;;  %s1420_s0 = inlined_call_operand.hbm [shape: f32[64,64], index: 0, kind: input, shape index: {}]   ;;  %s1421_s1 = inlined_call_operand.vmem [shape: f32[2,7,64], index: 1, kind: input, shape index: {}]   ;;  %s1422_s2 = inlined_call_operand.vmem [shape: f32[24,7], index: 2, kind: input, shape index: {}]   ;;  %s1423_s3 = inlined_call_operand.hbm [shape: f32[2,8,64], index: 3, kind: output, shape index: {}]  }
   0x1   :  { %9 = vsyncpa [#allocation4], 0 }
   0x2   :  { %11 = vsyncpa [#allocation4 + $0x1], 0  ;;  %s1114_s12 = smov 0   ;;  %s1116_s13 = smov 0  }
   0x3   :  { %s1118_s14 = smov 0   ;;  %s1120_s15 = smov 0  }
   0x4 LB: > { %s1135_s16 = sadd.s32 4294967295, %s1088_s15   ;;  %s822_s17 = sadd.s32 4294967294, %s1088_s15   ;;  %s1088_s15 = sphi %s1120_s15, %s1429_s15   ;;  %s1084_s14 = sphi %s1118_s14, %s1428_s14   ;;  %s1080_s13 = sphi %s1116_s13, %s1427_s13   ;;  %s1076_s12 = sphi %s1114_s12, %s1426_s12  }
   0x5   : > { %s1139_s18 = sadd.s32 1, %s1088_s15   ;;  %s92_s19 = sadd.s32 1, %s1084_s14 }
   0x6   : > { %s89_s20 = ssub.s32 %s1088_s15, %s1139_s18  ;;  %p102_p0 = scmp.ne.s32.totalorder %s1084_s14, %s1080_s13 }
   0x7   : > { %p90_p1 = scmp.eq.s32.totalorder %s89_s20, 0  ;;  %p103_p2 = scmp.eq.s32.totalorder %s1135_s16, 1 }
   0x8   : > { %p108_p3 = scmp.ne.s32.totalorder %s1080_s13, %s1076_s12  ;;  %p109_p4 = scmp.eq.s32.totalorder %s822_s17, 1 }
   0x9   : > { %s1150_s21 = scalar_select %p90_p1, %s1084_s14, %s92_s19  }
   0xa   : > { %p1152_p5 = por %p103_p2, %p102_p0  ;;  %p1156_p6 = por %p109_p4, %p108_p3 }
   0xb   : > { %p823_p7 = scmp.ge.s32.totalorder %s1088_s15, 1  ;;  %p116_p8 = scmp.lt.s32.totalorder %s1088_s15, 3 }
   0xc   : > { %p888_p9 = scmp.eq.s32.totalorder %s1135_s16, 0  ;;  %s127_s26 = sshll.u32 %s1420_s0, 4  ;;  %s128_s26 = int_to_ptr.hbm [resolvable:$true] %s127_s26 }
   0xd   : > { %p117_p10 = pnand %p823_p7, %p116_p8  ;;  %s1090_s27 = smov [#allocation2]  }
   0xe   : > { %s129_s28 = sshll.u32 %s1090_s27, 4  ;;  %s1091_s29 = smov 128   ;;  %s130_s28 = int_to_ptr.vmem [resolvable:$true] %s129_s28 }
   0xf   : > { %p880_p11 = pneg %p117_p10  ;;  %s1092_s30 = smov 8  }
  0x10   : > { %155 = sbr.rel (%p117_p10) target bundleno = 1047 (0x417), region = 32 }
  0x11   : > { %p881_p12 = pnand %p888_p9, %p880_p11 }
  0x13   : > { %883 = dma.hbm_to_vmem [thread:$0]  (!%p881_p12), %s128_s26, 1024, %s130_s28, [#allocation3], %s1091_s29, %s1091_s29, %s1092_s30  }
  0x15   : > { %1067 = dma.done.wait (%p888_p9), [#allocation3], 1024  }
  0x16   : > { %1069 = vsyncadd (%p888_p9), [#allocation3], 4294966272  ;;  %p179_p13 = scmp.lt.s32.totalorder %s1135_s16, 1  ;;  %vm197_vm0 = vcmask 1046528   ;;  %vm187_vm1 = vcmask 56320   ;;  %v184_v1 = vld [vmem:[%s1422_s2] sm:$0xff] }
  0x17   : > { %v185_v2 = vld [vmem:[%s1422_s2 + $0x8] sm:$0xff]  ;;  %vm292_vm2 = vcmask 1043456   ;;  %vm267_vm3 = vcmask 31744   ;;  %s1093_s19 = smov 124   ;;  %vm337_vm4 = vcmask 523264   ;;  %v1253_v60 = vld [vmem:[#allocation2 + $0x38] sm:$0xff] }
  0x18   : > { %s180_s4 = scalar_select %p179_p13, %s1135_s16, 1 }
  0x19   : > { %s176_s25 = sand.u32 1, %s1080_s13   ;;  %s871_s28 = sshll.u32 %s1135_s16, 3 }
  0x1a   : > { %s829_s5 = sshll.u32 %s180_s4, 3  ;;  %s828_s26 = sshll.u32 %s176_s25, 3 }
  0x1b   : > { %s182_s8 = scalar_lea.vmem %s1421_s1, %s829_s5  ;;  %s178_s27 = scalar_lea.vmem [#allocation5], %s828_s26 }
  0x1c   : > { %v183_v0 = vld [vmem:[%s182_s8] sm:$0x7f]  ;;  %s746_s4 = scalar_lea.hbm %s1423_s3, %s871_s28  ;;  %s748_s5 = sshll.u32 %s178_s27, 4  ;;  %s749_s5 = int_to_ptr.vmem [resolvable:$true] %s748_s5 }
  0x1d   : > { %830 = vmatpush.msk.msra.mxu0 %vm197_vm0, %v183_v0  ;;  %s750_s6 = sshll.u32 %s746_s4, 4  ;;  %s736_s7 = scalar_lea.sflag [#allocation4], %s176_s25  ;;  %s751_s6 = int_to_ptr.hbm [resolvable:$true] %s750_s6 }
  0x1e   : > { %831 = vmatmul.msk.f32.vlgmr.msra.gmra.mxu0 %vm187_vm1, %v184_v1  ;;  %s1036_s8 = sshra.s32 %s751_s6, 4  ;;  %s1042_s11 = scalar_lea.hbm %s1423_s3, 16  ;;  %s1037_s8 = int_to_ptr.hbm [resolvable:$true] %s1036_s8 }
  0x1f   : > { %s1038_s9 = scalar_lea.hbm %s1037_s8, 8  ;;  %p1043_p3 = scmp.lt.s32.totalorder %s1037_s8, %s1423_s3 }
  0x20   : > { %p1039_p0 = scmp.ne.s32.totalorder %s1037_s8, %s1038_s9  ;;  %p1044_p4 = scmp.lt.s32.totalorder %s1042_s11, %s1038_s9 }
  0x22   : > { %p1040_p1 = pnand %p1039_p0, %p1152_p5  ;;  %p1045_p7 = por %p1044_p4, %p1043_p3 }
  0x24   : > { %p1041_p2 = pneg %p1040_p1 }
  0x26   : > { %832 = vmatmul.msk.f32.gmra.mxu0 %vm187_vm1, %v185_v2  ;;  %p1046_p8 = pnand %p1045_p7, %p1041_p2 }
  0x9b   : > { %v218_v3 = vpop.f32.mrf.mxu0 }
  0x9c   : > { %227 = vxpose.xlu0.b32.start.end [1/1] (short) (narrow) %v218_v3, 64 }
  0xa3   : > { %v221_v4 = vpop.f32.mrf.mxu0 }
  0xa4   : > { %834 = vmatpush.msk.msra.mxu1 %vm292_vm2, %v221_v4  ;;  %v515_v9 = vrot.slane %v221_v4, 4 }
  0xa6   : > { %852 = vmatpush.msk.msra.mxu3 %vm292_vm2, %v515_v9 }
 0x140   : > { %v243_v5 = vpop.trf.xlu0 }
 0x141   : > { %835 = vmatmul.msk.f32.vlgmr.msra.gmra.mxu1 %vm267_vm3, %v243_v5 }
 0x142   : > { %499 = vrot.lane.b32.xlu0 %v243_v5, %s1093_s19 }
 0x148   : > { %v244_v6 = vpop.trf.xlu0 }
 0x149   : > { %836 = vmatmul.msk.f32.gmra.mxu1 %vm267_vm3, %v244_v6  ;;  %501 = vrot.lane.b32.xlu1 %v244_v6, %s1093_s19 }
 0x150   : > { %v245_v7 = vpop.trf.xlu0 }
 0x151   : > { %837 = vmatmul.msk.f32.gmra.mxu1 %vm267_vm3, %v245_v7  ;;  %503 = vrot.lane.b32.xlu1 %v245_v7, %s1093_s19  ;;  %v264_v7 = vld [vmem:[#allocation2 + $0x28] sm:$0xff] }
 0x158   : > { %v246_v8 = vpop.trf.xlu0 }
 0x159   : > { %838 = vmatmul.msk.f32.gmra.mxu1 %vm267_vm3, %v246_v8  ;;  %505 = vrot.lane.b32.xlu2 %v246_v8, %s1093_s19 }
 0x160   : > { %v247_v10 = vpop.trf.xlu0 }
 0x161   : > { %839 = vmatmul.msk.f32.gmra.mxu1 %vm267_vm3, %v247_v10  ;;  %507 = vrot.lane.b32.xlu2 %v247_v10, %s1093_s19 }
 0x168   : > { %v248_v11 = vpop.trf.xlu0 }
 0x169   : > { %840 = vmatmul.msk.f32.gmra.mxu1 %vm267_vm3, %v248_v11  ;;  %509 = vrot.lane.b32.xlu1 %v248_v11, %s1093_s19 }
 0x170   : > { %v249_v12 = vpop.trf.xlu0 }
 0x171   : > { %841 = vmatmul.msk.f32.gmra.mxu1 %vm267_vm3, %v249_v12  ;;  %511 = vrot.lane.b32.xlu2 %v249_v12, %s1093_s19 }
 0x178   : > { %v250_v13 = vpop.trf.xlu0 }
 0x179   : > { %842 = vmatmul.msk.f32.gmra.mxu1 %vm267_vm3, %v250_v13  ;;  %513 = vrot.lane.b32.xlu1 %v250_v13, %s1093_s19  ;;  %v1268_v13 = vld [vmem:[#allocation2 + $0x20] sm:$0xff] }
 0x1b3   : > { %v506_v19 = vpop.permute.xlu2 %505 }
 0x1b4   : > { %v500_v14 = vpop.permute.xlu0 %499 }
 0x1b5   : > { %853 = vmatmul.msk.f32.vlgmr.msra.gmra.mxu3 %vm267_vm3, %v500_v14 }
 0x1bb   : > { %v502_v15 = vpop.permute.xlu1 %501  ;;  %v508_v22 = vpop.permute.xlu2 %507 }
 0x1bd   : > { %854 = vmatmul.msk.f32.gmra.mxu3 %vm267_vm3, %v502_v15 }
 0x1be   : > { %v1197_v16 = vpop.f32.mrf.mxu1 }
 0x1bf   : > { %v338_v0 = vsel %vm337_vm4, %v1197_v16, -inf }
 0x1c3   : > { %v504_v17 = vpop.permute.xlu1 %503 }
 0x1c5   : > { %855 = vmatmul.msk.f32.gmra.mxu3 %vm267_vm3, %v504_v17 }
 0x1c6   : > { %v1200_v18 = vpop.f32.mrf.mxu1 }
 0x1c7   : > { %v341_v58 = vsel %vm337_vm4, %v1200_v18, -inf }
 0x1cb   : > { %v512_v28 = vpop.permute.xlu2 %511 }
 0x1cd   : > { %856 = vmatmul.msk.f32.gmra.mxu3 %vm267_vm3, %v506_v19 }
 0x1ce   : > { %v1203_v20 = vpop.f32.mrf.mxu1 }
 0x1cf   : > { %v344_v21 = vsel %vm337_vm4, %v1203_v20, -inf }
 0x1d0   : > { %345 = vmax.xlane.f32.xlu2 %v344_v21 }
 0x1d5   : > { %857 = vmatmul.msk.f32.gmra.mxu3 %vm267_vm3, %v508_v22  ;;  %v265_v22 = vld [vmem:[#allocation2 + $0x30] sm:$0xff] }
 0x1d6   : > { %v1208_v23 = vpop.f32.mrf.mxu1 }
 0x1d7   : > { %v347_v24 = vsel %vm337_vm4, %v1208_v23, -inf }
 0x1d8   : > { %348 = vmax.xlane.f32.xlu2 %v347_v24 }
 0x1db   : > { %v510_v25 = vpop.permute.xlu1 %509 }
 0x1dd   : > { %858 = vmatmul.msk.f32.gmra.mxu3 %vm267_vm3, %v510_v25 }
 0x1de   : > { %v325_v26 = vpop.f32.mrf.mxu1 }
 0x1df   : > { %v350_v27 = vsel %vm337_vm4, %v325_v26, -inf }
 0x1e0   : > { %351 = vmax.xlane.f32.xlu2 %v350_v27 }
 0x1e5   : > { %859 = vmatmul.msk.f32.gmra.mxu3 %vm267_vm3, %v512_v28  ;;  %v1282_v28 = vld [vmem:[#allocation2 + $0x18] sm:$0xff] }
 0x1e6   : > { %v328_v29 = vpop.f32.mrf.mxu1 }
 0x1e7   : > { %v353_v30 = vsel %vm337_vm4, %v328_v29, -inf }
 0x1e8   : > { %354 = vmax.xlane.f32.xlu2 %v353_v30 }
 0x1eb   : > { %v514_v31 = vpop.permute.xlu1 %513 }
 0x1ed   : > { %860 = vmatmul.msk.f32.gmra.mxu3 %vm267_vm3, %v514_v31 }
 0x1ee   : > { %v331_v32 = vpop.f32.mrf.mxu1 }
 0x1ef   : > { %v356_v33 = vsel %vm337_vm4, %v331_v32, -inf }
 0x1f0   : > { %357 = vmax.xlane.f32.xlu1 %v356_v33 }
 0x1f6   : > { %v334_v34 = vpop.f32.mrf.mxu1 }
 0x1f7   : > { %v359_v35 = vsel %vm337_vm4, %v334_v34, -inf }
 0x1f8   : > { %360 = vmax.xlane.f32.xlu2 %v359_v35 }
 0x238   : > { %v1219_v36 = vpop.f32.mrf.mxu3 }
 0x239   : > { %v575_v5 = vsel %vm337_vm4, %v1219_v36, -inf }
 0x240   : > { %v1221_v37 = vpop.f32.mrf.mxu3 }
 0x241   : > { %v578_v57 = vsel %vm337_vm4, %v1221_v37, -inf }
 0x243   : > { %v1223_v38 = vpop.xlane.xlu2 %345 }
 0x244   : > { %v364_v24 = vsub.f32 %v1203_v20, %v1223_v38  ;;  %v1289_v20 = vld [vmem:[#allocation2 + $0x10] sm:$0xff] }
 0x248   : > { %v1225_v39 = vpop.f32.mrf.mxu3 }
 0x249   : > { %v581_v55 = vsel %vm337_vm4, %v1225_v39, -inf }
 0x24b   : > { %v349_v40 = vpop.xlane.xlu2 %348 }
 0x24c   : > { %v365_v14 = vsub.f32 %v1208_v23, %v349_v40 }
 0x24e   : > { %v376_v17 = vmul.f32 1.442695, %v365_v14 }
 0x250   : > { %v1227_v41 = vpop.f32.mrf.mxu3 }
 0x251   : > { %v584_v42 = vsel %vm337_vm4, %v1227_v41, -inf }
 0x252   : > { %585 = vmax.xlane.f32.xlu1 %v584_v42 }
 0x253   : > { %v352_v44 = vpop.xlane.xlu2 %351 }
 0x254   : > { %v366_v2 = vsub.f32 %v325_v26, %v352_v44  ;;  %v374_v26 = vmul.f32 1.442695, %v364_v24 }
 0x256   : > { %v378_v3 = vmul.f32 1.442695, %v366_v2  ;;  %v186_v2 = vld [vmem:[%s1422_s2 + $0x10] sm:$0xff] }
 0x257   : > { %833 = vmatmul.msk.f32.gmra.mxu0 %vm187_vm1, %v186_v2 }
 0x258   : > { %v1231_v43 = vpop.f32.mrf.mxu3 }
 0x259   : > { %v587_v45 = vsel %vm337_vm4, %v1231_v43, -inf }
 0x25a   : > { %588 = vmax.xlane.f32.xlu1 %v587_v45 }
 0x25b   : > { %v355_v48 = vpop.xlane.xlu2 %354 }
 0x25c   : > { %v367_v61 = vsub.f32 %v328_v29, %v355_v48 }
 0x25e   : > { %v380_v63 = vmul.f32 1.442695, %v367_v61 }
 0x260   : > { %v1235_v46 = vpop.f32.mrf.mxu3 }
 0x261   : > { %v590_v47 = vsel %vm337_vm4, %v1235_v46, -inf }
 0x262   : > { %591 = vmax.xlane.f32.xlu1 %v590_v47 }
 0x263   : > { %v358_v4 = vpop.xlane.xlu1 %357 }
 0x264   : > { %v368_v8 = vsub.f32 %v331_v32, %v358_v4 }
 0x266   : > { %v382_v10 = vmul.f32 1.442695, %v368_v8 }
 0x268   : > { %v1239_v49 = vpop.f32.mrf.mxu3 }
 0x269   : > { %v593_v50 = vsel %vm337_vm4, %v1239_v49, -inf }
 0x26a   : > { %594 = vmax.xlane.f32.xlu1 %v593_v50 }
 0x26b   : > { %v361_v51 = vpop.xlane.xlu2 %360 }
 0x26c   : > { %v369_v52 = vsub.f32 %v334_v34, %v361_v51 }
 0x26e   : > { %v384_v53 = vmul.f32 1.442695, %v369_v52 }
 0x270   : > { %v1243_v54 = vpop.f32.mrf.mxu3  ;;  %928 = vpow2.f32 %v384_v53 }
 0x271   : > { %v596_v56 = vsel %vm337_vm4, %v1243_v54, -inf  ;;  %930 = vpow2.f32 %v380_v63 }
 0x272   : > { %582 = vmax.xlane.f32.xlu1 %v581_v55  ;;  %597 = vmax.xlane.f32.xlu2 %v596_v56  ;;  %932 = vpow2.f32 %v378_v3 }
 0x273   : > { %934 = vpow2.f32 %v382_v10 }
 0x274   : > { %936 = vpow2.f32 %v376_v17 }
 0x275   : > { %938 = vpow2.f32 %v374_v26 }
 0x276   : > { %v929_v59 = vpop.eup %928 }
 0x277   : > { %v1256_v62 = vmul.f32 %v929_v59, %v1253_v60  ;;  %v931_v6 = vpop.eup %930 }
 0x278   : > { %v1264_v9 = vmul.f32 %v931_v6, %v264_v7  ;;  %v933_v12 = vpop.eup %932 }
 0x279   : > { %v415_v1 = vsel %vm337_vm4, %v1256_v62, 0.0  ;;  %v1272_v15 = vmul.f32 %v933_v12, %v1268_v13  ;;  %v935_v21 = vpop.eup %934  ;;  %v260_v12 = vld [vmem:[#allocation2 + $0x8] sm:$0xff] }
 0x27a   : > { %579 = vmax.xlane.f32.xlu1 %v578_v57  ;;  %342 = vmax.xlane.f32.xlu2 %v341_v58  ;;  %v409_v11 = vsel %vm337_vm4, %v1264_v9, 0.0  ;;  %v1278_v25 = vmul.f32 %v935_v21, %v265_v22  ;;  %v937_v27 = vpop.eup %936 }
 0x27b   : > { %v406_v19 = vsel %vm337_vm4, %v1272_v15, 0.0  ;;  %v1285_v29 = vmul.f32 %v937_v27, %v1282_v28  ;;  %v939_v31 = vpop.eup %938  ;;  %v259_v27 = vld [vmem:[#allocation2] sm:$0xff] }
 0x27c   : > { %v412_v23 = vsel %vm337_vm4, %v1278_v25, 0.0  ;;  %v1292_v32 = vmul.f32 %v939_v31, %v1289_v20 }
 0x27d   : > { %v403_v30 = vsel %vm337_vm4, %v1285_v29, 0.0 }
 0x27e   : > { %v400_v33 = vsel %vm337_vm4, %v1292_v32, 0.0 }
 0x282   : > { %339 = vmax.xlane.f32.xlu2 %v338_v0  ;;  %416 = vadd.xlane.f32.xlu1 %v415_v1 }
 0x28a   : > { %576 = vmax.xlane.f32.xlu2 %v575_v5 }
 0x292   : > { %410 = vadd.xlane.f32.xlu2 %v409_v11 }
 0x29a   : > { %407 = vadd.xlane.f32.xlu2 %v406_v19 }
 0x2a2   : > { %413 = vadd.xlane.f32.xlu2 %v412_v23 }
 0x2aa   : > { %404 = vadd.xlane.f32.xlu2 %v403_v30 }
 0x2b2   : > { %401 = vadd.xlane.f32.xlu2 %v400_v33 }
 0x2c5   : > { %v586_v34 = vpop.xlane.xlu1 %585 }
 0x2c6   : > { %v602_v0 = vsub.f32 %v1227_v41, %v586_v34 }
 0x2c8   : > { %v613_v4 = vmul.f32 1.442695, %v602_v0 }
 0x2cd   : > { %v589_v35 = vpop.xlane.xlu1 %588 }
 0x2d5   : > { %v592_v38 = vpop.xlane.xlu1 %591 }
 0x2d6   : > { %v604_v40 = vsub.f32 %v1235_v46, %v592_v38  ;;  %v603_v46 = vsub.f32 %v1231_v43, %v589_v35 }
 0x2d8   : > { %v617_v42 = vmul.f32 1.442695, %v604_v40 }
 0x2da   : > { %940 = vpow2.f32 %v617_v42 }
 0x2dd   : > { %v595_v44 = vpop.xlane.xlu1 %594 }
 0x2de   : > { %v605_v45 = vsub.f32 %v1239_v49, %v595_v44  ;;  %v615_v49 = vmul.f32 1.442695, %v603_v46 }
 0x2e0   : > { %v941_v47 = vpop.eup %940  ;;  %v619_v48 = vmul.f32 1.442695, %v605_v45 }
 0x2e1   : > { %v1298_v50 = vmul.f32 %v941_v47, %v264_v7 }
 0x2e2   : > { %942 = vpow2.f32 %v619_v48 }
 0x2e3   : > { %v646_v51 = vsel %vm337_vm4, %v1298_v50, 0.0 }
 0x2e4   : > { %647 = vadd.xlane.f32.xlu1 %v646_v51 }
 0x2e5   : > { %v583_v52 = vpop.xlane.xlu1 %582  ;;  %v598_v53 = vpop.xlane.xlu2 %597 }
 0x2e6   : > { %v606_v55 = vsub.f32 %v1243_v54, %v598_v53  ;;  %v601_v10 = vsub.f32 %v1225_v39, %v583_v52 }
 0x2e8   : > { %v943_v56 = vpop.eup %942  ;;  %v621_v57 = vmul.f32 1.442695, %v606_v55  ;;  %v611_v21 = vmul.f32 1.442695, %v601_v10 }
 0x2e9   : > { %v1304_v58 = vmul.f32 %v943_v56, %v265_v22 }
 0x2ea   : > { %944 = vpow2.f32 %v621_v57 }
 0x2eb   : > { %v649_v59 = vsel %vm337_vm4, %v1304_v58, 0.0  ;;  %946 = vpow2.f32 %v615_v49 }
 0x2ec   : > { %650 = vadd.xlane.f32.xlu1 %v649_v59 }
 0x2ed   : > { %v580_v61 = vpop.xlane.xlu1 %579  ;;  %v343_v63 = vpop.xlane.xlu2 %342 }
 0x2ee   : > { %v363_v1 = vsub.f32 %v1200_v18, %v343_v63  ;;  %v600_v54 = vsub.f32 %v1221_v37, %v580_v61 }
 0x2f0   : > { %v372_v43 = vmul.f32 1.442695, %v363_v1  ;;  %v945_v3 = vpop.eup %944  ;;  %v609_v6 = vmul.f32 1.442695, %v600_v54 }
 0x2f1   : > { %v1316_v5 = vmul.f32 %v945_v3, %v1253_v60  ;;  %v947_v41 = vpop.eup %946 }
 0x2f2   : > { %948 = vpow2.f32 %v372_v43  ;;  %v1323_v14 = vmul.f32 %v947_v41, %v1268_v13 }
 0x2f3   : > { %v652_v18 = vsel %vm337_vm4, %v1316_v5, 0.0  ;;  %950 = vpow2.f32 %v613_v4 }
 0x2f4   : > { %653 = vadd.xlane.f32.xlu1 %v652_v18  ;;  %952 = vpow2.f32 %v609_v6  ;;  %v643_v24 = vsel %vm337_vm4, %v1323_v14, 0.0 }
 0x2f5   : > { %v417_v37 = vpop.xlane.xlu1 %416  ;;  %v340_v7 = vpop.xlane.xlu2 %339 }
 0x2f6   : > { %vm425_vm5 = vcmp.gt.f32.partialorder %v417_v37, 0.0  ;;  %v362_v8 = vsub.f32 %v1197_v16, %v340_v7 }
 0x2f7   : > { %v433_v11 = vsel %vm425_vm5, %v417_v37, 1.0 }
 0x2f8   : > { %954 = vrcp.f32 %v433_v11  ;;  %v370_v60 = vmul.f32 1.442695, %v362_v8  ;;  %v949_v17 = vpop.eup %948 }
 0x2f9   : > { %v1325_v19 = vmul.f32 %v949_v17, %v260_v12  ;;  %v951_v22 = vpop.eup %950 }
 0x2fa   : > { %956 = vpow2.f32 %v370_v60  ;;  %v953_v39 = vpop.eup %952  ;;  %v1334_v33 = vmul.f32 %v951_v22, %v1282_v28 }
 0x2fb   : > { %v397_v16 = vsel %vm337_vm4, %v1325_v19, 0.0  ;;  %958 = vpow2.f32 %v611_v21  ;;  %v1336_v34 = vmul.f32 %v953_v39, %v260_v12 }
 0x2fc   : > { %644 = vadd.xlane.f32.xlu1 %v643_v24  ;;  %398 = vadd.xlane.f32.xlu2 %v397_v16  ;;  %v640_v42 = vsel %vm337_vm4, %v1334_v33, 0.0 }
 0x2fd   : > { %v577_v26 = vpop.xlane.xlu2 %576 }
 0x2fe   : > { %v955_v23 = vpop.eup %954  ;;  %v599_v13 = vsub.f32 %v1219_v36, %v577_v26  ;;  %v634_v36 = vsel %vm337_vm4, %v1336_v34, 0.0 }
 0x2ff   : > { %v449_v30 = vmul.f32 %v955_v23, %v1256_v62 }
 0x300   : > { %v957_v31 = vpop.eup %956  ;;  %v607_v38 = vmul.f32 1.442695, %v599_v13 }
 0x301   : > { %843 = vmatpush.xpose.msk.msra.mxu2 %vm337_vm4, %v449_v30  ;;  %v1339_v35 = vmul.f32 %v957_v31, %v259_v27  ;;  %v959_v62 = vpop.eup %958 }
 0x302   : > { %960 = vpow2.f32 %v607_v38  ;;  %v1348_v44 = vmul.f32 %v959_v62, %v1289_v20 }
 0x303   : > { %v394_v40 = vsel %vm337_vm4, %v1339_v35, 0.0 }
 0x304   : > { %395 = vadd.xlane.f32.xlu0 %v394_v40  ;;  %641 = vadd.xlane.f32.xlu1 %v640_v42  ;;  %v637_v45 = vsel %vm337_vm4, %v1348_v44, 0.0  ;;  %v224_v42 = vpop.f32.mrf.mxu0 }
 0x305   : > { %635 = vadd.xlane.f32.xlu2 %v634_v36  ;;  %v411_v28 = vpop.xlane.xlu2 %410 }
 0x306   : > { %vm423_vm6 = vcmp.gt.f32.partialorder %v411_v28, 0.0 }
 0x307   : > { %v431_v55 = vsel %vm423_vm6, %v411_v28, 1.0  ;;  %vm497_vm6 = vcmask 519168  }
 0x308   : > { %v961_v47 = vpop.eup %960 }
 0x309   : > { %v1352_v51 = vmul.f32 %v961_v47, %v259_v27 }
 0x30b   : > { %v631_v52 = vsel %vm337_vm4, %v1352_v51, 0.0 }
 0x30c   : > { %638 = vadd.xlane.f32.xlu1 %v637_v45 }
 0x30d   : > { %v408_v48 = vpop.xlane.xlu2 %407 }
 0x30e   : > { %vm422_vm8 = vcmp.gt.f32.partialorder %v408_v48, 0.0 }
 0x30f   : > { %v430_v20 = vsel %vm422_vm8, %v408_v48, 1.0  ;;  %v687_v48 = vrot.slane %v224_v42, 4 }
 0x314   : > { %632 = vadd.xlane.f32.xlu1 %v631_v52 }
 0x315   : > { %v414_v53 = vpop.xlane.xlu2 %413 }
 0x316   : > { %vm424_vm7 = vcmp.gt.f32.partialorder %v414_v53, 0.0 }
 0x317   : > { %v432_v46 = vsel %vm424_vm7, %v414_v53, 1.0 }
 0x318   : > { %962 = vrcp.f32 %v432_v46 }
 0x319   : > { %964 = vrcp.f32 %v431_v55 }
 0x31a   : > { %966 = vrcp.f32 %v430_v20 }
 0x31d   : > { %v405_v56 = vpop.xlane.xlu2 %404 }
 0x31e   : > { %v963_v57 = vpop.eup %962  ;;  %vm421_vm9 = vcmp.gt.f32.partialorder %v405_v56, 0.0 }
 0x31f   : > { %v429_v49 = vsel %vm421_vm9, %v405_v56, 1.0  ;;  %v448_v59 = vmul.f32 %v963_v57, %v1278_v25  ;;  %v965_v61 = vpop.eup %964 }
 0x320   : > { %968 = vrcp.f32 %v429_v49  ;;  %v447_v63 = vmul.f32 %v965_v61, %v1264_v9  ;;  %v967_v0 = vpop.eup %966 }
 0x321   : > { %844 = vmatpush.xpose.msk.msra.mxu2 %vm337_vm4, %v448_v59  ;;  %v446_v43 = vmul.f32 %v967_v0, %v1272_v15 }
 0x325   : > { %845 = vmatpush.xpose.msk.msra.mxu2 %vm337_vm4, %v447_v63  ;;  %v402_v1 = vpop.xlane.xlu2 %401 }
 0x326   : > { %vm420_vm10 = vcmp.gt.f32.partialorder %v402_v1, 0.0  ;;  %v969_v2 = vpop.eup %968 }
 0x327   : > { %v428_v54 = vsel %vm420_vm10, %v402_v1, 1.0  ;;  %v445_v25 = vmul.f32 %v969_v2, %v1285_v29 }
 0x328   : > { %970 = vrcp.f32 %v428_v54 }
 0x329   : > { %846 = vmatpush.xpose.msk.msra.mxu2 %vm337_vm4, %v446_v43 }
 0x32d   : > { %847 = vmatpush.xpose.msk.msra.mxu2 %vm337_vm4, %v445_v25 }
 0x32e   : > { %v971_v3 = vpop.eup %970 }
 0x32f   : > { %v444_v4 = vmul.f32 %v971_v3, %v1292_v32 }
 0x331   : > { %848 = vmatpush.xpose.msk.msra.mxu2 %vm337_vm4, %v444_v4 }
 0x357   : > { %v648_v9 = vpop.xlane.xlu1 %647 }
 0x358   : > { %vm660_vm13 = vcmp.gt.f32.partialorder %v648_v9, 0.0 }
 0x359   : > { %v668_v37 = vsel %vm660_vm13, %v648_v9, 1.0 }
 0x35f   : > { %v651_v6 = vpop.xlane.xlu1 %650 }
 0x360   : > { %vm661_vm11 = vcmp.gt.f32.partialorder %v651_v6, 0.0 }
 0x361   : > { %v669_v41 = vsel %vm661_vm11, %v651_v6, 1.0 }
 0x367   : > { %v654_v18 = vpop.xlane.xlu1 %653 }
 0x368   : > { %vm662_vm12 = vcmp.gt.f32.partialorder %v654_v18, 0.0 }
 0x369   : > { %v670_v15 = vsel %vm662_vm12, %v654_v18, 1.0 }
 0x36a   : > { %972 = vrcp.f32 %v670_v15 }
 0x36b   : > { %974 = vrcp.f32 %v669_v41 }
 0x36c   : > { %976 = vrcp.f32 %v668_v37 }
 0x36f   : > { %v645_v7 = vpop.xlane.xlu1 %644  ;;  %v399_v29 = vpop.xlane.xlu2 %398 }
 0x370   : > { %v973_v8 = vpop.eup %972  ;;  %vm659_vm14 = vcmp.gt.f32.partialorder %v645_v7, 0.0  ;;  %vm419_vm15 = vcmp.gt.f32.partialorder %v399_v29, 0.0 }
 0x371   : > { %v667_v32 = vsel %vm659_vm14, %v645_v7, 1.0  ;;  %v427_v10 = vsel %vm419_vm15, %v399_v29, 1.0  ;;  %v686_v11 = vmul.f32 %v973_v8, %v1316_v5  ;;  %v975_v12 = vpop.eup %974 }
 0x372   : > { %978 = vrcp.f32 %v427_v10  ;;  %v685_v60 = vmul.f32 %v975_v12, %v1304_v58  ;;  %v977_v17 = vpop.eup %976 }
 0x373   : > { %861 = vmatpush.xpose.msk.msrb.mxu0 %vm337_vm4, %v686_v11  ;;  %980 = vrcp.f32 %v667_v32  ;;  %v684_v5 = vmul.f32 %v977_v17, %v1298_v50 }
 0x377   : > { %v396_v21 = vpop.xlane.xlu0 %395  ;;  %862 = vmatpush.xpose.msk.msrb.mxu0 %vm337_vm4, %v685_v60  ;;  %v642_v22 = vpop.xlane.xlu1 %641 }
 0x378   : > { %vm418_vm0 = vcmp.gt.f32.partialorder %v396_v21, 0.0  ;;  %vm658_vm1 = vcmp.gt.f32.partialorder %v642_v22, 0.0  ;;  %v979_v16 = vpop.eup %978  ;;  %v636_v27 = vpop.xlane.xlu2 %635 }
 0x379   : > { %v426_v24 = vsel %vm418_vm0, %v396_v21, 1.0  ;;  %v666_v39 = vsel %vm658_vm1, %v642_v22, 1.0  ;;  %v981_v26 = vpop.eup %980  ;;  %v443_v23 = vmul.f32 %v979_v16, %v1325_v19  ;;  %vm656_vm2 = vcmp.gt.f32.partialorder %v636_v27, 0.0 }
 0x37a   : > { %982 = vrcp.f32 %v426_v24  ;;  %v683_v58 = vmul.f32 %v981_v26, %v1323_v14  ;;  %v664_v38 = vsel %vm656_vm2, %v636_v27, 1.0 }
 0x37b   : > { %984 = vrcp.f32 %v666_v39  ;;  %863 = vmatpush.xpose.msk.msrb.mxu0 %vm337_vm4, %v684_v5  ;;  %849 = vmatpush.xpose.msk.msra.mxu2 %vm337_vm4, %v443_v23 }
 0x37f   : > { %864 = vmatpush.xpose.msk.msrb.mxu0 %vm337_vm4, %v683_v58  ;;  %v639_v30 = vpop.xlane.xlu1 %638 }
 0x380   : > { %v983_v13 = vpop.eup %982  ;;  %vm657_vm3 = vcmp.gt.f32.partialorder %v639_v30, 0.0 }
 0x381   : > { %v985_v31 = vpop.eup %984  ;;  %v442_v50 = vmul.f32 %v983_v13, %v1339_v35  ;;  %v665_v40 = vsel %vm657_vm3, %v639_v30, 1.0 }
 0x382   : > { %v682_v19 = vmul.f32 %v985_v31, %v1334_v33  ;;  %986 = vrcp.f32 %v665_v40 }
 0x383   : > { %850 = vmatpush.xpose.msk.msra.mxu2 %vm337_vm4, %v442_v50  ;;  %988 = vrcp.f32 %v664_v38 }
 0x384   : > { %865 = vmatpush.xpose.msk.msrb.mxu0 %vm337_vm4, %v682_v19 }
 0x386   : > { %851 = vmatmul.msk.f32.vlgmr.msra.gmra.mxu2 %vm337_vm4, %v224_v42 }
 0x387   : > { %v633_v14 = vpop.xlane.xlu1 %632 }
 0x388   : > { %v987_v36 = vpop.eup %986  ;;  %vm655_vm5 = vcmp.gt.f32.partialorder %v633_v14, 0.0 }
 0x389   : > { %v663_v62 = vsel %vm655_vm5, %v633_v14, 1.0  ;;  %v681_v35 = vmul.f32 %v987_v36, %v1348_v44  ;;  %v989_v28 = vpop.eup %988 }
 0x38a   : > { %990 = vrcp.f32 %v663_v62  ;;  %v680_v33 = vmul.f32 %v989_v28, %v1336_v34 }
 0x38b   : > { %866 = vmatpush.xpose.msk.msrb.mxu0 %vm337_vm4, %v681_v35 }
 0x38f   : > { %867 = vmatpush.xpose.msk.msrb.mxu0 %vm337_vm4, %v680_v33 }
 0x390   : > { %v991_v45 = vpop.eup %990 }
 0x391   : > { %v679_v47 = vmul.f32 %v991_v45, %v1352_v51 }
 0x393   : > { %868 = vmatpush.xpose.msk.msrb.mxu0 %vm337_vm4, %v679_v47 }
 0x396   : > { %869 = vmatmul.msk.f32.vlgmr.msrb.gmra.mxu0 %vm337_vm4, %v687_v48 }
 0x409   : > { %v494_v44 = vpop.f32.mrf.mxu2 }
 0x40a   : > { %498 = vst.msk [vmem:[%s178_s27] sm:$0xf] %vm497_vm6, %v494_v44 }
 0x413   : > { %v731_v34 = vpop.f32.mrf.mxu0 }
 0x414   : > { %734 = vst.msk [vmem:[%s178_s27 + $0x4] sm:$0xf] %vm497_vm6, %v731_v34 }
 0x415   : > { %1049 = shalt.err (!%p1046_p8)
}
 0x416   : > { %878 = dma.vmem_to_hbm [thread:$0]  (%p1152_p5), %s749_s5, 128, %s751_s6, %s736_s7  }
 0x417 PF: > { %p890_p9 = scmp.ge.s32.totalorder %s1088_s15, 2  ;;  %s762_s20 = sand.u32 1, %s1076_s12  }
 0x418   : > { %s763_s24 = scalar_lea.sflag [#allocation4], %s762_s20 }
 0x419   : > { %p885_p10 = pnand %p890_p9, %p1156_p6 }
 0x41b   : > { %p886_p11 = pneg %p885_p10 }
 0x41d   : > { %1071 = dma.done.wait (%p886_p11), %s763_s24, 128  }
 0x41e   : > { %1073 = vsyncadd (%p886_p11), %s763_s24, 4294967168  ;;  %p14_p12 = scmp.ge.s32.totalorder %s1139_s18, 4   ;;  %s1426_s12 = smov %s1080_s13 }
 0x41f   : > { %s1427_s13 = smov %s1084_s14  ;;  %s1428_s14 = smov %s1150_s21 }
 0x420   : > { %s1429_s15 = smov %s1139_s18  ;;  %16 = sbr.rel (!%p14_p12) target bundleno = 4 (0x4), region = 72 }
 0x425   :  { %769 = vsyncpa [#allocation3], 1 }
 0x426   :  { %771 = vsyncpa [#allocation3 + $0x1], 1 }
 0x427   :  { %772 = vsyncpa [#allocation4], 1 }
 0x428   :  { %774 = vsyncpa [#allocation4 + $0x1], 1 }

</bundles_post_ra>
